<compile_context>
chip_gen: v7x
topology: tpu7x:2x2x1
jax: 0.10.0
libtpu: 0.0.40
codegen_flags: <defaults>
</compile_context>

<pallas_src>
import jax
import jax.numpy as jnp
from jax.experimental import pallas as pl
from jax.experimental.pallas import tpu as pltpu


def _vmem_budget_bytes():
    """~75% of physical VMEM (leaves headroom for Mosaic internal scratch)."""
    try:
        cap = int(pltpu.get_tpu_info().vmem_capacity_bytes)
    except Exception:
        cap = 64 << 20  # conservative fallback: v7x physical VMEM
    return (cap * 3) // 4


def _pick_tile_rows(n_rows, h, itemsize, vmem_budget):
    """Largest TM (multiple of 8) whose FULL working set fits the budget.

    Working set per row of tile:
      - 2 inputs x 2 pipeline buffers in the input dtype  -> 4 * h * itemsize
      - ~6 live f32 (TM, H) intermediates from the in-kernel upcast -> 24 * h
    """
    bytes_per_row = h * (4 * itemsize + 6 * 4)
    tm = vmem_budget // max(1, bytes_per_row)
    # BlockSpec pipelining already reaches ~85% of HBM roofline at ~1 MiB
    # blocks; keep each input buffer around 1-2 MiB.
    tm = min(tm, (2 << 20) // max(1, h * itemsize))
    # Keep >= 8 grid steps for large inputs so the "parallel" axis can be
    # sharded across v7x's two TensorCores.
    if n_rows >= 8 * 64:
        tm = min(tm, pl.cdiv(n_rows, 8))
    tm = max(8, (int(tm) // 8) * 8)
    # No taller than the (8-padded) row count.
    tm = min(tm, ((n_rows + 7) // 8) * 8)
    return max(8, tm)


def _make_kernel(n_rows, tile_rows, mask_tail):
    def kernel(x_ref, t_ref, o_ref):
        x = x_ref[...].astype(jnp.float32)   # (TM, H) f32 math on bf16/f32 input
        t = t_ref[...].astype(jnp.float32)   # (TM, H)

        # --- target terms (t <= 0 contributes 0, matching torch xlogy at 0) ---
        tpos = t > 0
        t_eff = jnp.where(tpos, t, 0.0)
        log_t = jnp.log(jnp.where(tpos, t, 1.0))

        # --- log_softmax pieces along last axis (the original dim=2) ---
        m = jnp.max(x, axis=-1, keepdims=True)
        lse = jnp.log(jnp.sum(jnp.exp(x - m), axis=-1, keepdims=True))

        # sum_h t*(log t - (x - m - lse)) = S1 - S2 + (m + lse) * S3
        s1 = jnp.sum(t_eff * log_t, axis=-1, keepdims=True)
        s2 = jnp.sum(t_eff * x, axis=-1, keepdims=True)
        s3 = jnp.sum(t_eff, axis=-1, keepdims=True)
        row = s1 - s2 + (m + lse) * s3        # (TM, 1) per-row contribution

        if mask_tail:
            # Ragged last tile: rows >= n_rows contain undefined data; zero
            # them at the per-row level (select, so NaN/inf garbage is safe).
            row_ids = (pl.program_id(0) * tile_rows
                       + jax.lax.broadcasted_iota(jnp.int32, (tile_rows, 1), 0))
            row = jnp.where(row_ids < n_rows, row, 0.0)

        partial = jnp.sum(row)
        # Lane-dense (8,128) output block; wrapper reads element [0,0].
        o_ref[...] = jnp.full(o_ref.shape, partial, dtype=jnp.float32)

    return kernel


def kl_div_loss(x, target, *, tile_rows=None):
    """x, target: (B, S, H). Returns scalar float32 loss (reduction='mean')."""
    assert x.shape == target.shape and x.ndim == 3
    B, S, H = x.shape
    n_elems = B * S * H                      # mean divisor: FULL logical count
    R = B * S

    # TODO(synk): for H << 128, pack 128//H rows per vreg (lane-dense layout)
    # with a segmented in-kernel reduce; current layout underuses lanes there.
    # TODO(synk): no H-tiling / online logsumexp yet, so vocab-scale H that
    # cannot fit a single (8, H) tile in VMEM is unsupported.
    x2 = x.reshape(R, H)
    t2 = target.reshape(R, H)

    itemsize = jnp.dtype(x.dtype).itemsize
    vmem_budget = _vmem_budget_bytes()
    TM = tile_rows if tile_rows is not None else _pick_tile_rows(
        R, H, itemsize, vmem_budget)

    num_tiles = pl.cdiv(R, TM)
    mask_tail = (R % TM) != 0                # no wrapper-side jnp.pad

    kernel = _make_kernel(R, TM, mask_tail)

    partials = pl.pallas_call(
        kernel,
        out_shape=jax.ShapeDtypeStruct((num_tiles, 8, 128), jnp.float32),
        grid=(num_tiles,),
        in_specs=[
            pl.BlockSpec((TM, H), lambda i: (i, 0)),
            pl.BlockSpec((TM, H), lambda i: (i, 0)),
        ],
        out_specs=pl.BlockSpec((1, 8, 128), lambda i: (i, 0, 0)),
        compiler_params=pltpu.CompilerParams(
            dimension_semantics=("parallel",),
            vmem_limit_bytes=int(vmem_budget),
        ),
    )(x2, t2)

    # Tiny final reduction + mean in the wrapper, with N from the full shape.
    return jnp.sum(partials[:, 0, 0]) * jnp.float32(1.0 / n_elems)


def kl_div_loss_ref(x, target):
    logp = jax.nn.log_softmax(x.astype(jnp.float32), axis=2)
    t = target.astype(jnp.float32)
    pw = jnp.where(t > 0, t * (jnp.log(jnp.where(t > 0, t, 1.0)) - logp), 0.0)
    return jnp.sum(pw) / t.size


if __name__ == "__main__":
    B, S, H = 2, 8, 32
    key = jax.random.PRNGKey(0)
    kx, kt = jax.random.split(key)

    x = jax.random.normal(kx, (B, S, H), dtype=jnp.float32)
    # target: valid probability distribution along dim=2 (soft labels)
    target = jax.nn.softmax(
        jax.random.normal(kt, (B, S, H), dtype=jnp.float32), axis=2)

    loss = jax.block_until_ready(kl_div_loss(x, target))
    ref = jax.block_until_ready(kl_div_loss_ref(x, target))

    assert jnp.allclose(loss, ref, rtol=1e-5, atol=1e-6), (loss, ref)

    # Also exercise a ragged-tail configuration (R % TM != 0, in-kernel mask).
    loss_ragged = jax.block_until_ready(kl_div_loss(x, target, tile_rows=8 * 3))
    assert jnp.allclose(loss_ragged, ref, rtol=1e-5, atol=1e-6), (loss_ragged, ref)

    print("KERNEL_OK")
</pallas_src>

<mosaic_0001>
module attributes {stable_mosaic.version = 11 : i64} {
  func.func @kernel(%arg0: i32, %arg1: memref<16x32xf32, #tpu.memory_space<vmem>>, %arg2: memref<16x32xf32, #tpu.memory_space<vmem>>, %arg3: memref<1x8x128xf32, #tpu.memory_space<vmem>>) attributes {dimension_semantics = [#tpu.dimension_semantics<parallel>], iteration_bounds = array<i64: 1>, scalar_prefetch = 0 : i64, scratch_operands = 0 : i64, tpu.core_type = #tpu.core_type<tc>, window_params = [{transform_indices = @transform_0, window_bounds = array<i64: 16, 32>}, {transform_indices = @transform_1, window_bounds = array<i64: 16, 32>}, {transform_indices = @transform_2, window_bounds = array<i64: 1, 8, 128>}]} {
    %c0 = arith.constant 0 : index
    %c0_0 = arith.constant 0 : index
    %0 = vector.load %arg1[%c0, %c0_0] : memref<16x32xf32, #tpu.memory_space<vmem>>, vector<16x32xf32>
    %c0_1 = arith.constant 0 : index
    %c0_2 = arith.constant 0 : index
    %1 = vector.load %arg2[%c0_1, %c0_2] : memref<16x32xf32, #tpu.memory_space<vmem>>, vector<16x32xf32>
    %cst = arith.constant 0.000000e+00 : f32
    %2 = vector.broadcast %cst : f32 to vector<16x32xf32>
    %3 = arith.cmpf ogt, %1, %2 : vector<16x32xf32>
    %cst_3 = arith.constant 0.000000e+00 : f32
    %4 = vector.broadcast %cst_3 : f32 to vector<16x32xf32>
    %5 = arith.select %3, %1, %4 : vector<16x32xi1>, vector<16x32xf32>
    %cst_4 = arith.constant 1.000000e+00 : f32
    %6 = vector.broadcast %cst_4 : f32 to vector<16x32xf32>
    %7 = arith.select %3, %1, %6 : vector<16x32xi1>, vector<16x32xf32>
    %8 = math.log %7 : vector<16x32xf32>
    %cst_5 = arith.constant dense<0xFF800000> : vector<16xf32>
    %9 = vector.multi_reduction <maximumf>, %0, %cst_5 [1] : vector<16x32xf32> to vector<16xf32>
    %10 = vector.shape_cast %9 : vector<16xf32> to vector<16x1xf32>
    %11 = vector.broadcast %10 : vector<16x1xf32> to vector<16x32xf32>
    %12 = arith.subf %0, %11 : vector<16x32xf32>
    %13 = math.exp %12 : vector<16x32xf32>
    %cst_6 = arith.constant dense<0.000000e+00> : vector<16xf32>
    %14 = vector.multi_reduction <add>, %13, %cst_6 [1] : vector<16x32xf32> to vector<16xf32>
    %15 = vector.shape_cast %14 : vector<16xf32> to vector<16x1xf32>
    %16 = math.log %15 : vector<16x1xf32>
    %17 = arith.mulf %5, %8 : vector<16x32xf32>
    %cst_7 = arith.constant dense<0.000000e+00> : vector<16xf32>
    %18 = vector.multi_reduction <add>, %17, %cst_7 [1] : vector<16x32xf32> to vector<16xf32>
    %19 = vector.shape_cast %18 : vector<16xf32> to vector<16x1xf32>
    %20 = arith.mulf %5, %0 : vector<16x32xf32>
    %cst_8 = arith.constant dense<0.000000e+00> : vector<16xf32>
    %21 = vector.multi_reduction <add>, %20, %cst_8 [1] : vector<16x32xf32> to vector<16xf32>
    %22 = vector.shape_cast %21 : vector<16xf32> to vector<16x1xf32>
    %cst_9 = arith.constant dense<0.000000e+00> : vector<16xf32>
    %23 = vector.multi_reduction <add>, %5, %cst_9 [1] : vector<16x32xf32> to vector<16xf32>
    %24 = vector.shape_cast %23 : vector<16xf32> to vector<16x1xf32>
    %25 = arith.subf %19, %22 : vector<16x1xf32>
    %26 = arith.addf %10, %16 : vector<16x1xf32>
    %27 = arith.mulf %26, %24 : vector<16x1xf32>
    %28 = arith.addf %25, %27 : vector<16x1xf32>
    %29 = vector.shape_cast %28 : vector<16x1xf32> to vector<1x16x1xf32>
    %cst_10 = arith.constant dense<0.000000e+00> : vector<1xf32>
    %30 = vector.multi_reduction <add>, %29, %cst_10 [1, 2] : vector<1x16x1xf32> to vector<1xf32>
    %31 = vector.shape_cast %30 : vector<1xf32> to vector<1x1x1xf32>
    %32 = vector.extract %31[0, 0, 0] : f32 from vector<1x1x1xf32>
    %33 = vector.broadcast %32 : f32 to vector<1x8x128xf32>
    %c0_11 = arith.constant 0 : index
    %c0_12 = arith.constant 0 : index
    %c0_13 = arith.constant 0 : index
    %34 = vector.load %arg3[%c0_11, %c0_12, %c0_13] : memref<1x8x128xf32, #tpu.memory_space<vmem>>, vector<1x8x128xf32>
    tpu.vector_store %arg3[%c0_11, %c0_12, %c0_13], %33 {strides = array<i32>} : memref<1x8x128xf32, #tpu.memory_space<vmem>>, vector<1x8x128xf32>,
    return
  }
  func.func @transform_0(%arg0: i32) -> (i32, i32) {
    %c0_i32 = arith.constant 0 : i32
    %c0_i32_0 = arith.constant 0 : i32
    return %arg0, %c0_i32 : i32, i32
  }
  func.func @transform_1(%arg0: i32) -> (i32, i32) {
    %c0_i32 = arith.constant 0 : i32
    %c0_i32_0 = arith.constant 0 : i32
    return %arg0, %c0_i32 : i32, i32
  }
  func.func @transform_2(%arg0: i32) -> (i32, i32, i32) {
    %c0_i32 = arith.constant 0 : i32
    %c0_i32_0 = arith.constant 0 : i32
    %c0_i32_1 = arith.constant 0 : i32
    return %arg0, %c0_i32, %c0_i32_0 : i32, i32, i32
  }
}

</mosaic_0001>

<bundles_post_ra>
// kernel: tpu_custom_call.1
= control target key start
LH: loop header
LB: loop body
LE: loop exit
PB: predicated region body
PF: predicated region fallthrough
CT: control target
= control target key end

     0   :  { %7 = vsyncpa [#allocation3], 0  ;;  %s295_s0 = inlined_call_operand.hbm [shape: f32[16,32], index: 0, kind: input, shape index: {}]   ;;  %s296_s1 = inlined_call_operand.hbm [shape: f32[16,32], index: 1, kind: input, shape index: {}]   ;;  %s297_s2 = inlined_call_operand.hbm [shape: f32[1,8,128], index: 2, kind: output, shape index: {}]  }
   0x1   :  { %8 = vsyncpa [#allocation6], 0 }
   0x2   :  { %9 = vsyncpa [#allocation4], 0  ;;  %s229_s9 = smov [#allocation2]   ;;  %s157_s13 = scalar_lea.hbm %s295_s0, 256 }
   0x3   :  { %s15_s10 = sshll.u32 %s229_s9, 4  ;;  %p158_p0 = scmp.ne.s32.totalorder %s295_s0, %s157_s13  ;;  %s16_s10 = int_to_ptr.vmem [resolvable:$true] %s15_s10 }
   0x4   :  { %p161_p1 = scmp.lt.u32.totalorder %s157_s13, %s295_s0 }
   0x6   :  { %p163_p2 = pnand %p161_p1, %p158_p0 }
   0x8   :  { %166 = shalt.err (!%p163_p2)
}
   0x9   :  { %s167_s18 = scalar_lea.vmem %s16_s10, 256  ;;  %p172_p4 = scmp.lt.s32.totalorder %s16_s10, %s16_s10 }
   0xa   :  { %p168_p3 = scmp.ne.s32.totalorder %s16_s10, %s167_s18  ;;  %p173_p5 = scmp.lt.s32.totalorder %s167_s18, %s167_s18 }
   0xc   :  { %p174_p6 = por %p173_p5, %p172_p4 }
   0xe   :  { %p175_p7 = pnand %p174_p6, %p168_p3 }
  0x10   :  { %178 = shalt.err (!%p175_p7)
}
  0x11   :  { %s230_s19 = smov 128   ;;  %s231_s20 = smov 8  }
  0x12   :  { %21 = dma.hbm_to_vmem [thread:$0]  %s295_s0, 256, %s16_s10, [#allocation3], %s230_s19, %s230_s19, %s231_s20  }
  0x13   :  { %s232_s23 = smov [#allocation5]   ;;  %s179_s27 = scalar_lea.hbm %s296_s1, 256 }
  0x14   :  { %s27_s24 = sshll.u32 %s232_s23, 4  ;;  %p180_p8 = scmp.ne.s32.totalorder %s296_s1, %s179_s27  ;;  %s28_s24 = int_to_ptr.vmem [resolvable:$true] %s27_s24 }
  0x15   :  { %p183_p9 = scmp.lt.u32.totalorder %s179_s27, %s296_s1 }
  0x17   :  { %p185_p10 = pnand %p183_p9, %p180_p8 }
  0x19   :  { %188 = shalt.err (!%p185_p10)
}
  0x1a   :  { %s189_s4 = scalar_lea.vmem %s28_s24, 256  ;;  %p194_p12 = scmp.lt.s32.totalorder %s28_s24, %s28_s24 }
  0x1b   :  { %p190_p11 = scmp.ne.s32.totalorder %s28_s24, %s189_s4  ;;  %p195_p13 = scmp.lt.s32.totalorder %s189_s4, %s189_s4 }
  0x1d   :  { %p196_p0 = por %p195_p13, %p194_p12 }
  0x1f   :  { %p197_p1 = pnand %p196_p0, %p190_p11 }
  0x21   :  { %200 = shalt.err (!%p197_p1)
}
  0x22   :  { %33 = dma.hbm_to_vmem [thread:$0]  %s296_s1, 256, %s28_s24, [#allocation6], %s230_s19, %s230_s19, %s231_s20  }
  0x23   :  { %223 = dma.done.wait [#allocation3], 256  }
  0x24   :  { %224 = vsyncadd [#allocation3], 4294967040 }
  0x25   :  { %225 = dma.done.wait [#allocation6], 256  }
  0x26   :  { %226 = vsyncadd [#allocation6], 4294967040  ;;  %vm54_vm0 = vcmask 261120   ;;  %v40_v0 = vld [vmem:[#allocation2] sm:$0xff]  ;;  %v41_v1 = vld [vmem:[#allocation2 + $0x8] sm:$0xff]  ;;  %vm107_vm3 = vcmask 7168  }
  0x27   :  { %v55_v2 = vsel %vm54_vm0, %v40_v0, -inf  ;;  %v58_v3 = vsel %vm54_vm0, %v41_v1, -inf  ;;  %v42_v4 = vld [vmem:[#allocation5] sm:$0xff]  ;;  %v43_v14 = vld [vmem:[#allocation5 + $0x8] sm:$0xff]  ;;  %s233_s1 = smov [#allocation7]  }
  0x28   :  { %56 = vmax.xlane.f32.xlu0 %v55_v2  ;;  %vm44_vm1 = vcmp.gt.f32.partialorder %v42_v4, 0.0  ;;  %vm45_vm2 = vcmp.gt.f32.partialorder %v43_v14, 0.0  ;;  %s128_s6 = sshll.u32 %s233_s1, 4  ;;  %s129_s6 = int_to_ptr.vmem [resolvable:$true] %s128_s6 }
  0x29   :  { %v48_v5 = vsel %vm44_vm1, %v42_v4, 1.0  ;;  %v46_v8 = vsel %vm44_vm1, %v42_v4, 0.0  ;;  %v49_v15 = vsel %vm45_vm2, %v43_v14, 1.0  ;;  %v47_v25 = vsel %vm45_vm2, %v43_v14, 0.0  ;;  %s201_s8 = scalar_lea.vmem %s129_s6, 128  ;;  %p206_p3 = scmp.lt.s32.totalorder %s129_s6, %s129_s6 }
  0x2a   :  { %145 = vlog2.f32 %v48_v5  ;;  %v85_v11 = vmul.f32 %v46_v8, %v40_v0  ;;  %v93_v13 = vsel %vm54_vm0, %v46_v8, 0.0  ;;  %v86_v31 = vmul.f32 %v47_v25, %v41_v1  ;;  %p202_p2 = scmp.ne.s32.totalorder %s129_s6, %s201_s8  ;;  %p207_p4 = scmp.lt.s32.totalorder %s201_s8, %s201_s8 }
  0x2b   :  { %147 = vlog2.f32 %v49_v15  ;;  %v96_v33 = vsel %vm54_vm0, %v47_v25, 0.0 }
  0x2c   :  { %59 = vmax.xlane.f32.xlu0 %v58_v3  ;;  %v87_v12 = vsel %vm54_vm0, %v85_v11, 0.0  ;;  %v90_v32 = vsel %vm54_vm0, %v86_v31, 0.0  ;;  %p208_p5 = por %p207_p4, %p206_p3 }
  0x2e   :  { %p209_p6 = pnand %p208_p5, %p202_p2 }
  0x34   :  { %v146_v6 = vpop.eup %145 }
  0x35   :  { %v51_v7 = vmul.f32 0.6931472, %v146_v6  ;;  %v148_v22 = vpop.eup %147 }
  0x36   :  { %v53_v23 = vmul.f32 0.6931472, %v148_v22 }
  0x37   :  { %v77_v9 = vmul.f32 %v51_v7, %v46_v8 }
  0x38   :  { %v78_v27 = vmul.f32 %v53_v23, %v47_v25 }
  0x39   :  { %v79_v10 = vsel %vm54_vm0, %v77_v9, 0.0 }
  0x3a   :  { %80 = vadd.xlane.f32.xlu0 %v79_v10  ;;  %v82_v30 = vsel %vm54_vm0, %v78_v27, 0.0 }
  0x3e   :  { %88 = vadd.xlane.f32.xlu0 %v87_v12 }
  0x42   :  { %94 = vadd.xlane.f32.xlu0 %v93_v13 }
  0xb5   :  { %v57_v16 = vpop.xlane.xlu0 %56 }
  0xb6   :  { %v61_v17 = vsub.f32 %v40_v0, %v57_v16 }
  0xb8   :  { %v63_v18 = vmul.f32 1.442695, %v61_v17 }
  0xb9   :  { %v60_v19 = vpop.xlane.xlu0 %59 }
  0xba   :  { %149 = vpow2.f32 %v63_v18  ;;  %v62_v20 = vsub.f32 %v41_v1, %v60_v19 }
  0xbc   :  { %v65_v21 = vmul.f32 1.442695, %v62_v20 }
  0xbe   :  { %151 = vpow2.f32 %v65_v21 }
  0xc4   :  { %v150_v24 = vpop.eup %149 }
  0xc5   :  { %v67_v26 = vsel %vm54_vm0, %v150_v24, 0.0 }
  0xc6   :  { %68 = vadd.xlane.f32.xlu1 %v67_v26 }
  0xc7   :  { %v81_v35 = vpop.xlane.xlu0 %80 }
  0xc8   :  { %v152_v28 = vpop.eup %151 }
  0xc9   :  { %v70_v29 = vsel %vm54_vm0, %v152_v28, 0.0 }
  0xca   :  { %71 = vadd.xlane.f32.xlu1 %v70_v29 }
  0xcb   :  { %v89_v37 = vpop.xlane.xlu0 %88 }
  0xcc   :  { %v99_v48 = vsub.f32 %v81_v35, %v89_v37 }
  0xce   :  { %83 = vadd.xlane.f32.xlu1 %v82_v30 }
  0xcf   :  { %v95_v42 = vpop.xlane.xlu0 %94 }
  0xd2   :  { %91 = vadd.xlane.f32.xlu1 %v90_v32 }
  0xd6   :  { %97 = vadd.xlane.f32.xlu1 %v96_v33 }
 0x153   :  { %v69_v34 = vpop.xlane.xlu1 %68 }
 0x154   :  { %153 = vlog2.f32 %v69_v34 }
 0x157   :  { %v72_v36 = vpop.xlane.xlu1 %71 }
 0x158   :  { %155 = vlog2.f32 %v72_v36 }
 0x15b   :  { %v84_v38 = vpop.xlane.xlu1 %83 }
 0x15e   :  { %v154_v39 = vpop.eup %153 }
 0x15f   :  { %v74_v40 = vmul.f32 0.6931472, %v154_v39  ;;  %v92_v41 = vpop.xlane.xlu1 %91 }
 0x160   :  { %v100_v50 = vsub.f32 %v84_v38, %v92_v41 }
 0x161   :  { %v101_v43 = vadd.f32 %v74_v40, %v57_v16 }
 0x162   :  { %v156_v44 = vpop.eup %155 }
 0x163   :  { %v76_v45 = vmul.f32 0.6931472, %v156_v44  ;;  %v103_v46 = vmul.f32 %v101_v43, %v95_v42  ;;  %v98_v47 = vpop.xlane.xlu1 %97 }
 0x165   :  { %v102_v49 = vadd.f32 %v76_v45, %v60_v19  ;;  %v105_v51 = vadd.f32 %v103_v46, %v99_v48 }
 0x167   :  { %v104_v52 = vmul.f32 %v102_v49, %v98_v47  ;;  %v108_v54 = vsel %vm107_vm3, %v105_v51, 0.0 }
 0x169   :  { %v106_v53 = vadd.f32 %v104_v52, %v100_v50 }
 0x16b   :  { %v109_v55 = vsel %vm107_vm3, %v106_v53, 0.0 }
 0x16c   :  { %v110_v56 = vadd.f32 %v109_v55, %v108_v54 }
 0x16e   :  { %111 = vadd.xlane.f32.xlu0 %v110_v56 }
 0x1fb   :  { %v112_v57 = vpop.xlane.xlu0 %111 }
 0x1fc   :  { %v113_v58 = vrot.slane %v112_v57, 4 }
 0x1fe   :  { %v114_v59 = vadd.f32 %v113_v58, %v112_v57 }
 0x200   :  { %v115_v60 = vrot.slane %v114_v59, 2 }
 0x202   :  { %v116_v61 = vadd.f32 %v115_v60, %v114_v59 }
 0x204   :  { %v117_v62 = vrot.slane %v116_v61, 1 }
 0x206   :  { %v118_v63 = vadd.f32 %v117_v62, %v116_v61 }
 0x208   :  { %138 = vpush %v118_v63 }
 0x239   :  { %s139_s7 = spop %138 }
 0x23a   :  { %v120_v0 = vstv %s139_s7 }
 0x23b   :  { %121 = vst [vmem:[#allocation7] sm:$0xff] %v120_v0 }
 0x23c   :  { %212 = shalt.err (!%p209_p6)
}
 0x23d   :  { %s213_s11 = scalar_lea.hbm %s297_s2, 128 }
 0x23e   :  { %p214_p7 = scmp.ne.s32.totalorder %s297_s2, %s213_s11  ;;  %p217_p8 = scmp.lt.u32.totalorder %s213_s11, %s297_s2 }
 0x240   :  { %p219_p9 = pnand %p217_p8, %p214_p7 }
 0x242   :  { %222 = shalt.err (!%p219_p9)
}
 0x243   :  { %131 = dma.vmem_to_hbm [thread:$0]  %s129_s6, 128, %s297_s2, [#allocation4]  }
 0x244   :  { %227 = dma.done.wait [#allocation4], 128  }
 0x245   :  { %228 = vsyncadd [#allocation4], 4294967168 }
 0x246   :  { %135 = vsyncpa [#allocation3], 1 }
 0x247   :  { %136 = vsyncpa [#allocation6], 1 }
 0x248   :  { %137 = vsyncpa [#allocation4], 1 }

</bundles_post_ra>
